<compile_context>
chip_gen: v7x
topology: tpu7x:2x2x1
jax: 0.10.0
libtpu: 0.0.40
codegen_flags: <defaults>
</compile_context>

<pallas_src>
import functools
import math

import jax
import jax.numpy as jnp
import numpy as np
from jax import lax
from jax.experimental import pallas as pl
from jax.experimental.pallas import tpu as pltpu


# ----------------------------- pool kernel ---------------------------------

def _pool_kernel(x_ref, q_ref, o_ref, *, heads, nq):
    c = x_ref.shape[0]
    inv_sqrt_c = 1.0 / math.sqrt(float(c))     # (c**-0.25)**2, applied once to q

    x = x_ref[...]                              # (C, L), input dtype (bf16 stays bf16)
    q = q_ref[...] * inv_sqrt_c                 # (C, H*NQ), python-float scale keeps dtype

    # dot = x^T @ q -> (L, H*NQ): contract dim 0 of both operands, no explicit .T
    dot = lax.dot_general(x, q, (((0,), (0,)), ((), ())),
                          preferred_element_type=jnp.float32)

    # numerically stable softmax over L (axis 0); one column per (head, query)
    m = jnp.max(dot, axis=0, keepdims=True)     # (1, H*NQ)
    e = jnp.exp(dot - m)                        # (L, H*NQ)
    denom = jnp.sum(e, axis=0, keepdims=True)   # (1, H*NQ)

    # Value matmul on the UNnormalized weights (the softmax 1/sum is a per-column
    # scale and commutes with the contraction over L).  Native (C,L)@(L,H*NQ).
    out_full = jnp.dot(x, e.astype(x.dtype),
                       preferred_element_type=jnp.float32)   # (C, H*NQ)

    # Fold softmax normalization and the 1/heads of the head-mean into one tiny
    # per-column scale (reciprocal + multiply instead of a divide over a big tile).
    # pl.reciprocal(..., approx=True) would move this to the EUP; kept exact so the
    # f32 self-check holds at ~1e-5.
    col_scale = pl.reciprocal(denom, approx=False) * (1.0 / heads)
    out_full = out_full * col_scale                           # (C, H*NQ)

    # Mean over heads: sum the NQ-wide head column groups via a tiny constant
    # selection matmul (avoids unaligned lane slices).
    if heads == 1:
        out_mean = out_full
    else:
        hq = heads * nq
        row = lax.broadcasted_iota(jnp.int32, (hq, nq), 0)
        col = lax.broadcasted_iota(jnp.int32, (hq, nq), 1)
        sel = jnp.zeros((hq, nq), jnp.float32)
        for h in range(heads):
            sel = sel + (row == col + h * nq).astype(jnp.float32)
        out_mean = jnp.dot(out_full, sel, preferred_element_type=jnp.float32)

    o_ref[...] = out_mean.astype(o_ref.dtype)


def attention_pool(x, query_embeds):
    """forward_pool: x (B, C, L), query_embeds (H, C, NQ) -> (B, C, NQ)."""
    b, c, length = x.shape
    heads, c2, nq = query_embeds.shape
    assert c == c2
    q_cat = _concat_queries(query_embeds)       # (C, H*NQ), resident across batches

    kernel = functools.partial(_pool_kernel, heads=heads, nq=nq)
    return pl.pallas_call(
        kernel,
        out_shape=jax.ShapeDtypeStruct((b, c, nq), x.dtype),
        grid_spec=pltpu.PrefetchScalarGridSpec(
            num_scalar_prefetch=0,
            grid=(b,),
            in_specs=[
                pl.BlockSpec((None, c, length), lambda i: (i, 0, 0)),
                pl.BlockSpec((c, heads * nq), lambda i: (0, 0)),   # same block every step -> no re-DMA
            ],
            out_specs=pl.BlockSpec((None, c, nq), lambda i: (i, 0, 0)),
        ),
        compiler_params=pltpu.CompilerParams(
            dimension_semantics=("parallel",)),
    )(x, q_cat)


# ---------------------------- unpool kernel ---------------------------------

def _unpool_kernel(x_ref, q_ref, o_ref, *, heads, nq):
    c = x_ref.shape[0]
    inv_sqrt_c = 1.0 / math.sqrt(float(c))

    x = x_ref[...]                              # (C, L)
    q = q_ref[...] * inv_sqrt_c                 # (C, H*NQ)

    # dot = q^T @ x -> (H*NQ, L): contract dim 0 of both operands, no explicit .T
    dot = lax.dot_general(q, x, (((0,), (0,)), ((), ())),
                          preferred_element_type=jnp.float32)

    # softmax over L (lane axis), one row per (head, query)
    m = jnp.max(dot, axis=1, keepdims=True)     # (H*NQ, 1)
    e = jnp.exp(dot - m)
    denom = jnp.sum(e, axis=1, keepdims=True)   # (H*NQ, 1)
    p = e * pl.reciprocal(denom, approx=False)  # (H*NQ, L), values in (0, 1]

    # per-head max over its NQ query rows, then mean over heads -> (1, L)
    if heads == 1:
        w = jnp.max(p, axis=0, keepdims=True)
    else:
        ridx = lax.broadcasted_iota(jnp.int32, p.shape, 0)
        w = None
        for h in range(heads):
            in_head = jnp.logical_and(ridx >= h * nq, ridx < (h + 1) * nq)
            # p > 0 everywhere, so 0.0 is a safe masked fill for the group max.
            w_h = jnp.max(jnp.where(in_head, p, 0.0), axis=0, keepdims=True)
            w = w_h if w is None else w + w_h
        w = w * (1.0 / heads)

    # single elementwise pass over the (C, L) tile (lean epilogue for v5e)
    o_ref[...] = (x * w).astype(o_ref.dtype)


def attention_unpool(x, query_embeds):
    """forward_unpool: x (B, C, L), query_embeds (H, C, NQ) -> (B, C, L)."""
    b, c, length = x.shape
    heads, c2, nq = query_embeds.shape
    assert c == c2
    q_cat = _concat_queries(query_embeds)

    # TODO(synk): for very large C*L (v7x 64 MiB VMEM) tile L inside the grid with an
    # online-softmax stats pass instead of whole-L blocks.
    kernel = functools.partial(_unpool_kernel, heads=heads, nq=nq)
    return pl.pallas_call(
        kernel,
        out_shape=jax.ShapeDtypeStruct((b, c, length), x.dtype),
        grid_spec=pltpu.PrefetchScalarGridSpec(
            num_scalar_prefetch=0,
            grid=(b,),
            in_specs=[
                pl.BlockSpec((None, c, length), lambda i: (i, 0, 0)),
                pl.BlockSpec((c, heads * nq), lambda i: (0, 0)),
            ],
            out_specs=pl.BlockSpec((None, c, length), lambda i: (i, 0, 0)),
        ),
        compiler_params=pltpu.CompilerParams(
            dimension_semantics=("parallel",)),
    )(x, q_cat)


# ----------------------------- helpers --------------------------------------

def _concat_queries(query_embeds):
    heads, c, nq = query_embeds.shape
    # (H, C, NQ) -> (C, H*NQ), head-major along the fused query axis.
    return jnp.transpose(query_embeds, (1, 0, 2)).reshape(c, heads * nq)


# ----------------------------- reference ------------------------------------

def pool_ref(x, q):
    b, c, length = x.shape
    h, _, nq = q.shape
    s = 1.0 / (float(c) ** 0.25)
    dot = jnp.einsum("bcl,hcq->bhlq", x * s, q * s)
    dot = jax.nn.softmax(dot, axis=2)
    out = jnp.einsum("bcl,bhlq->bhcq", x, dot)
    return jnp.mean(out, axis=1)


def unpool_ref(x, q):
    b, c, length = x.shape
    h, _, nq = q.shape
    s = 1.0 / (float(c) ** 0.25)
    dot = jnp.einsum("hcq,bcl->bhql", q * s, x * s)
    dot = jax.nn.softmax(dot, axis=3)
    dot = jnp.max(dot, axis=2, keepdims=True)          # (b, h, 1, l)
    out = x[:, None, :, :] * dot                       # (b, h, c, l)
    return jnp.mean(out, axis=1)


# ------------------------------- main ----------------------------------------

if __name__ == "__main__":
    # Small shapes consistent with the module: (B, C, L) time-series input.
    B, C, L = 2, 32, 16
    HEADS, NUM_QUERIES = 2, 4

    key = jax.random.PRNGKey(0)
    kx, kq = jax.random.split(key)
    x = jax.random.normal(kx, (B, C, L), dtype=jnp.float32)
    # Deterministic init of nn.Parameter(torch.randn(heads, c, num_queries)).
    query_embeds = jax.random.normal(kq, (HEADS, C, NUM_QUERIES), dtype=jnp.float32)

    out_pool = attention_pool(x, query_embeds)
    out_unpool = attention_unpool(x, query_embeds)
    jax.block_until_ready((out_pool, out_unpool))

    np.testing.assert_allclose(np.asarray(out_pool),
                               np.asarray(pool_ref(x, query_embeds)),
                               rtol=2e-5, atol=2e-5)
    np.testing.assert_allclose(np.asarray(out_unpool),
                               np.asarray(unpool_ref(x, query_embeds)),
                               rtol=2e-5, atol=2e-5)

    print("KERNEL_OK")
</pallas_src>

<mosaic_0001>
module attributes {stable_mosaic.version = 11 : i64} {
  func.func @_pool_kernel(%arg0: i32, %arg1: memref<1x32x16xf32, #tpu.memory_space<vmem>>, %arg2: memref<32x8xf32, #tpu.memory_space<vmem>>, %arg3: memref<1x32x4xf32, #tpu.memory_space<vmem>>) attributes {dimension_semantics = [#tpu.dimension_semantics<parallel>], iteration_bounds = array<i64: 2>, scalar_prefetch = 0 : i64, scratch_operands = 0 : i64, tpu.core_type = #tpu.core_type<tc>, window_params = [{transform_indices = @transform_0, window_bounds = array<i64: 1, 32, 16>}, {pipeline_mode = #tpu.pipeline_mode<synchronous>, transform_indices = @transform_1, window_bounds = array<i64: 32, 8>}, {transform_indices = @transform_2, window_bounds = array<i64: 1, 32, 4>}]} {
    %c0 = arith.constant 0 : index
    %c0_0 = arith.constant 0 : index
    %c0_1 = arith.constant 0 : index
    %0 = vector.load %arg1[%c0, %c0_0, %c0_1] : memref<1x32x16xf32, #tpu.memory_space<vmem>>, vector<1x32x16xf32>
    %1 = vector.shape_cast %0 : vector<1x32x16xf32> to vector<32x16xf32>
    %c0_2 = arith.constant 0 : index
    %c0_3 = arith.constant 0 : index
    %2 = vector.load %arg2[%c0_2, %c0_3] : memref<32x8xf32, #tpu.memory_space<vmem>>, vector<32x8xf32>
    %cst = arith.constant 0.176776692 : f32
    %3 = vector.broadcast %cst : f32 to vector<32x8xf32>
    %4 = arith.mulf %2, %3 : vector<32x8xf32>
    %cst_4 = arith.constant dense<0.000000e+00> : vector<16x8xf32>
    %5 = tpu.matmul %1, %4, %cst_4 {dimension_numbers = #tpu.dot_dimension_numbers<[0], [0], [1], [1], [0, 1, 1, 1], [], []>} : vector<32x16xf32>, vector<32x8xf32>, vector<16x8xf32> -> vector<16x8xf32>
    %cst_5 = arith.constant dense<0xFF800000> : vector<8xf32>
    %6 = vector.multi_reduction <maximumf>, %5, %cst_5 [0] : vector<16x8xf32> to vector<8xf32>
    %7 = vector.shape_cast %6 : vector<8xf32> to vector<1x8xf32>
    %8 = vector.broadcast %7 : vector<1x8xf32> to vector<16x8xf32>
    %9 = arith.subf %5, %8 : vector<16x8xf32>
    %10 = math.exp %9 : vector<16x8xf32>
    %cst_6 = arith.constant dense<0.000000e+00> : vector<8xf32>
    %11 = vector.multi_reduction <add>, %10, %cst_6 [0] : vector<16x8xf32> to vector<8xf32>
    %12 = vector.shape_cast %11 : vector<8xf32> to vector<1x8xf32>
    %cst_7 = arith.constant dense<0.000000e+00> : vector<32x8xf32>
    %13 = tpu.matmul %1, %10, %cst_7 {dimension_numbers = #tpu.dot_dimension_numbers<[1], [0], [0], [1], [0, 0, 1, 1], [], []>} : vector<32x16xf32>, vector<16x8xf32>, vector<32x8xf32> -> vector<32x8xf32>
    %14 = tpu.reciprocal %12 : vector<1x8xf32> -> vector<1x8xf32>
    %cst_8 = arith.constant 5.000000e-01 : f32
    %15 = vector.broadcast %cst_8 : f32 to vector<1x8xf32>
    %16 = arith.mulf %14, %15 : vector<1x8xf32>
    %17 = vector.broadcast %16 : vector<1x8xf32> to vector<32x8xf32>
    %18 = arith.mulf %13, %17 : vector<32x8xf32>
    %19 = tpu.iota {dimensions = array<i32: 0>} : vector<8x4xi32>
    %20 = tpu.iota {dimensions = array<i32: 1>} : vector<8x4xi32>
    %cst_9 = arith.constant 0.000000e+00 : f32
    %21 = vector.broadcast %cst_9 : f32 to vector<8x4xf32>
    %c0_i32 = arith.constant 0 : i32
    %22 = vector.broadcast %c0_i32 : i32 to vector<8x4xi32>
    %23 = arith.addi %20, %22 : vector<8x4xi32>
    %24 = arith.cmpi eq, %19, %23 : vector<8x4xi32>
    %25 = arith.extui %24 : vector<8x4xi1> to vector<8x4xi32>
    %26 = arith.sitofp %25 : vector<8x4xi32> to vector<8x4xf32>
    %27 = arith.addf %21, %26 : vector<8x4xf32>
    %c4_i32 = arith.constant 4 : i32
    %28 = vector.broadcast %c4_i32 : i32 to vector<8x4xi32>
    %29 = arith.addi %20, %28 : vector<8x4xi32>
    %30 = arith.cmpi eq, %19, %29 : vector<8x4xi32>
    %31 = arith.extui %30 : vector<8x4xi1> to vector<8x4xi32>
    %32 = arith.sitofp %31 : vector<8x4xi32> to vector<8x4xf32>
    %33 = arith.addf %27, %32 : vector<8x4xf32>
    %cst_10 = arith.constant dense<0.000000e+00> : vector<32x4xf32>
    %34 = tpu.matmul %18, %33, %cst_10 {dimension_numbers = #tpu.dot_dimension_numbers<[1], [0], [0], [1], [0, 0, 1, 1], [], []>} : vector<32x8xf32>, vector<8x4xf32>, vector<32x4xf32> -> vector<32x4xf32>
    %c0_11 = arith.constant 0 : index
    %c0_12 = arith.constant 0 : index
    %c0_13 = arith.constant 0 : index
    %35 = vector.load %arg3[%c0_11, %c0_12, %c0_13] : memref<1x32x4xf32, #tpu.memory_space<vmem>>, vector<1x32x4xf32>
    %36 = vector.shape_cast %35 : vector<1x32x4xf32> to vector<32x4xf32>
    %37 = vector.shape_cast %34 : vector<32x4xf32> to vector<1x32x4xf32>
    tpu.vector_store %arg3[%c0_11, %c0_12, %c0_13], %37 {strides = array<i32>} : memref<1x32x4xf32, #tpu.memory_space<vmem>>, vector<1x32x4xf32>,
    return
  }
  func.func @transform_0(%arg0: i32) -> (i32, i32, i32) {
    %c0_i32 = arith.constant 0 : i32
    %c0_i32_0 = arith.constant 0 : i32
    %c0_i32_1 = arith.constant 0 : i32
    return %arg0, %c0_i32, %c0_i32_0 : i32, i32, i32
  }
  func.func @transform_1(%arg0: i32) -> (i32, i32) {
    %c0_i32 = arith.constant 0 : i32
    %c0_i32_0 = arith.constant 0 : i32
    %c0_i32_1 = arith.constant 0 : i32
    return %c0_i32, %c0_i32_0 : i32, i32
  }
  func.func @transform_2(%arg0: i32) -> (i32, i32, i32) {
    %c0_i32 = arith.constant 0 : i32
    %c0_i32_0 = arith.constant 0 : i32
    %c0_i32_1 = arith.constant 0 : i32
    return %arg0, %c0_i32, %c0_i32_0 : i32, i32, i32
  }
}

</mosaic_0001>

<bundles_post_ra>
// kernel: tpu_custom_call.1
= control target key start
LH: loop header
LB: loop body
LE: loop exit
PB: predicated region body
PF: predicated region fallthrough
CT: control target
= control target key end

     0   :  { %s693_s9 = smov 0   ;;  %s741_s0 = inlined_call_operand.vmem [shape: f32[2,32,16], index: 0, kind: input, shape index: {}]   ;;  %s742_s1 = inlined_call_operand.vmem [shape: f32[32,8], index: 1, kind: input, shape index: {}]   ;;  %s743_s2 = inlined_call_operand.vmem [shape: f32[2,32,4], index: 2, kind: output, shape index: {}]  }
   0x1 LB: > { %s569_s10 = sadd.s32 4294967295, %s675_s9   ;;  %p573_p0 = scmp.ge.s32.totalorder %s675_s9, 1  ;;  %s675_s9 = sphi %s693_s9, %s12_s9  }
   0x2   : > { %p112_p1 = scmp.lt.s32.totalorder %s675_s9, 3 }
   0x4   : > { %p113_p2 = pnand %p573_p0, %p112_p1 }
   0x5   : > { %p134_p3 = scmp.lt.s32.totalorder (!%p113_p2), %s569_s10, 1  ;;  %v148_v0 = vld [vmem:[%s742_s1] sm:$0xff] (!%p113_p2)  ;;  %v149_v1 = vld [vmem:[%s742_s1 + $0x8] sm:$0xff] (!%p113_p2)  ;;  %v150_v5 = vld [vmem:[%s742_s1 + $0x10] sm:$0xff] (!%p113_p2)  ;;  %vm188_vm0 = vcmask (!%p113_p2), 261120   ;;  %vm295_vm1 = vcmask (!%p113_p2), 130048   ;;  %v399_v37 = vlaneseq (!%p113_p2) }
   0x6   : > { %116 = sbr.rel (%p113_p2) target bundleno = 834 (0x342), region = 28  ;;  %v152_v2 = vmul.f32 (!%p113_p2), 0.17677669, %v148_v0  ;;  %v153_v3 = vmul.f32 (!%p113_p2), 0.17677669, %v149_v1  ;;  %v151_v6 = vld [vmem:[%s742_s1 + $0x18] sm:$0xff] (!%p113_p2) }
   0x7   : > { %v154_v7 = vmul.f32 (!%p113_p2), 0.17677669, %v150_v5  ;;  %v155_v8 = vmul.f32 (!%p113_p2), 0.17677669, %v151_v6  ;;  %vm270_vm2 = vcmask (!%p113_p2), 64512   ;;  %v402_v38 = vand.u32 (!%p113_p2), 127, %v399_v37 }
   0x8   : > { %v640_v4 = vpack.c.bf16 (!%p113_p2), %v153_v3, %v152_v2  ;;  %v400_v39 = vshrl.u32 (!%p113_p2), %v399_v37, 7  ;;  %v677_v41 = vmov (!%p113_p2), 0.0   ;;  %vm509_vm5 = vcmask (!%p113_p2), 31744  }
   0x9   : > { %v644_v10 = vpack.c.bf16 (!%p113_p2), %v155_v8, %v154_v7  ;;  %v407_v40 = vadd.s32 (!%p113_p2), 4, %v402_v38 }
   0xa   : > { %641 = vmatprep.subr.bf16.mxu0 (!%p113_p2), %v640_v4  ;;  %vm403_vm3 = vcmp.eq.s32.totalorder (!%p113_p2), %v400_v39, %v402_v38 }
   0xb   : > { %643 = vmatpush3.bf16.msra.mxu0 (!%p113_p2), %v640_v4  ;;  %vm408_vm4 = vcmp.eq.s32.totalorder (!%p113_p2), %v400_v39, %v407_v40  ;;  %v584_v42 = vsel (!%p113_p2), %vm403_vm3, 1.0, %v677_v41 }
   0xc   : > { %645 = vmatprep.subr.bf16.mxu0 (!%p113_p2), %v644_v10  ;;  %v585_v43 = vsel (!%p113_p2), %vm408_vm4, 1.0, %v677_v41 }
   0xd   : > { %s745_s10 = smov (!%p134_p3, %s569_s10), 1  ;;  %v411_v44 = vadd.f32 %v585_v43, %v584_v42 }
   0xe   : > { %s592_s19 = sshll.u32 %s745_s10, 5 }
   0xf   : > { %s138_s22 = scalar_lea.vmem %s741_s0, %s592_s19  ;;  %647 = vmatpush3.bf16.msra.mxu0 %v644_v10  ;;  %s143_s25 = scalar_lea.vmem %s743_s2, %s592_s19 }
  0x10   : > { %v144_v9 = vld [vmem:[%s138_s22] sm:$0xff]  ;;  %v145_v11 = vld [vmem:[%s138_s22 + $0x8] sm:$0xff]  ;;  %v146_v12 = vld [vmem:[%s138_s22 + $0x10] sm:$0xff]  ;;  %632 = vmatprep.subr.mxu0 %v411_v44 }
  0x11   : > { %156 = vxpose.xlu0.b32.start [1/4] (short) (narrow) %v144_v9, 16  ;;  %v147_v13 = vld [vmem:[%s138_s22 + $0x18] sm:$0xff]  ;;  %626 = vmatprep.mubr.msk.f32.mxu1 %vm295_vm1, %v144_v9 }
  0x15   : > { %157 = vxpose.xlu0.b32.cont [2/4] (short) (narrow) %v145_v11, 16 }
  0x19   : > { %158 = vxpose.xlu0.b32.cont [3/4] (short) (narrow) %v146_v12, 16 }
  0x1d   : > { %159 = vxpose.xlu0.b32.end [4/4] (short) (narrow) %v147_v13, 16 }
  0x91   : > { %v172_v14 = vpop.trf.xlu0 }
  0x92   : > { %619 = vmatprep.mubr.msk.f32.mxu0 %vm188_vm0, %v172_v14 }
  0x95   : > { %v173_v15 = vpop.trf.xlu0 }
  0x96   : > { %620 = vmatmul.mubr.msk.f32.vlgmr.msra.gmra.mrb[0].mxu0 %vm188_vm0, %v173_v15 }
  0x97   : > { %633 = vmatpush3.msra.mxu0 %v411_v44 }
 0x169   : > { %v621_v16 = vpop.f32.mrb[0].mxu0 }
 0x16a   : > { %v272_v17 = vsel %vm270_vm2, %v621_v16, -inf  ;;  %v261_v18 = vpop.f32.mrb[1].mxu0 }
 0x16b   : > { %v271_v19 = vsel %vm270_vm2, %v261_v18, -inf }
 0x16c   : > { %v273_v20 = vmax.f32 %v271_v19, %v272_v17 }
 0x16e   : > { %v274_v21 = vrot.slane %v273_v20, 4 }
 0x170   : > { %v275_v22 = vmax.f32 %v273_v20, %v274_v21 }
 0x172   : > { %v276_v23 = vrot.slane %v275_v22, 2 }
 0x174   : > { %v277_v24 = vmax.f32 %v275_v22, %v276_v23 }
 0x176   : > { %v278_v25 = vrot.slane %v277_v24, 1 }
 0x178   : > { %v279_v26 = vmax.f32 %v277_v24, %v278_v25 }
 0x17a   : > { %v280_v27 = vsub.f32 %v261_v18, %v279_v26  ;;  %v281_v28 = vsub.f32 %v621_v16, %v279_v26 }
 0x17c   : > { %v282_v29 = vmul.f32 1.442695, %v280_v27  ;;  %v284_v30 = vmul.f32 1.442695, %v281_v28 }
 0x17e   : > { %663 = vpow2.f32 %v282_v29 }
 0x17f   : > { %665 = vpow2.f32 %v284_v30 }
 0x188   : > { %v664_v31 = vpop.eup %663 }
 0x189   : > { %v666_v32 = vpop.eup %665  ;;  %v286_v33 = vsel %vm270_vm2, %v664_v31, 0.0 }
 0x18a   : > { %v287_v34 = vsel %vm270_vm2, %v666_v32, 0.0  ;;  %v648_v35 = vpack.c.bf16 %v666_v32, %v664_v31 }
 0x18b   : > { %v288_v36 = vadd.f32 %v287_v34, %v286_v33 }
 0x18c   : > { %649 = vmatprep.subr.bf16.mxu1 %v648_v35 }
 0x18d   : > { %651 = vmatpush3.bf16.msra.mxu1 %v648_v35  ;;  %v289_v45 = vrot.slane %v288_v36, 4 }
 0x18e   : > { %652 = vmatprep.subr.mxu1 %v411_v44 }
 0x18f   : > { %v290_v46 = vadd.f32 %v289_v45, %v288_v36 }
 0x190   : > { %627 = vmatmul.mubr.msk.f32.vlgmr.msra.gmra.mrb[0].mxu1 %vm295_vm1, %v145_v11 }
 0x191   : > { %629 = vmatprep.mubr.msk.f32.mxu1 %vm295_vm1, %v146_v12  ;;  %653 = vmatpush3.msra.mxu1 %v411_v44  ;;  %v291_v47 = vrot.slane %v290_v46, 2 }
 0x193   : > { %v292_v48 = vadd.f32 %v291_v47, %v290_v46 }
 0x194   : > { %630 = vmatmul.mubr.msk.f32.gmra.mrb[2].mxu1 %vm295_vm1, %v147_v13 }
 0x195   : > { %v293_v49 = vrot.slane %v292_v48, 1 }
 0x197   : > { %v294_v50 = vadd.f32 %v293_v49, %v292_v48 }
 0x199   : > { %667 = vrcp.f32 %v294_v50 }
 0x1a3   : > { %v668_v51 = vpop.eup %667 }
 0x1a4   : > { %v394_v52 = vmul.f32 0.5, %v668_v51 }
 0x263   : > { %v628_v53 = vpop.f32.mrb[0].mxu1 }
 0x264   : > { %v396_v54 = vmul.f32 %v628_v53, %v394_v52  ;;  %v374_v55 = vpop.f32.mrb[1].mxu1 }
 0x265   : > { %v395_v56 = vmul.f32 %v394_v52, %v374_v55 }
 0x267   : > { %v631_v57 = vpop.f32.mrb[2].mxu1  ;;  %634 = vmatprep.mubr.msk.f32.mxu0 %vm270_vm2, %v395_v56 }
 0x268   : > { %v398_v58 = vmul.f32 %v631_v57, %v394_v52  ;;  %v384_v59 = vpop.f32.mrb[3].mxu1  ;;  %635 = vmatmul.mubr.msk.f32.vlgmr.msra.gmra.mrb[2].mxu0 %vm270_vm2, %v396_v54 }
 0x269   : > { %v397_v60 = vmul.f32 %v394_v52, %v384_v59 }
 0x26b   : > { %637 = vmatprep.mubr.msk.f32.mxu1 %vm270_vm2, %v397_v60 }
 0x26c   : > { %638 = vmatmul.mubr.msk.f32.vlgmr.msra.gmra.mrb[4].mxu1 %vm270_vm2, %v398_v58 }
 0x33b   : > { %v636_v61 = vpop.f32.mrb[2].mxu0 }
 0x33c   : > { %511 = vst.msk [vmem:[%s143_s25 + $0x8] sm:$0xff] %vm509_vm5, %v636_v61  ;;  %v490_v62 = vpop.f32.mrb[3].mxu0 }
 0x33d   : > { %510 = vst.msk [vmem:[%s143_s25] sm:$0xff] %vm509_vm5, %v490_v62 }
 0x33f   : > { %v639_v63 = vpop.f32.mrb[4].mxu1 }
 0x340   : > { %513 = vst.msk [vmem:[%s143_s25 + $0x18] sm:$0xff] %vm509_vm5, %v639_v63  ;;  %v500_v0 = vpop.f32.mrb[5].mxu1 }
 0x341   : > { %512 = vst.msk [vmem:[%s143_s25 + $0x10] sm:$0xff] %vm509_vm5, %v500_v0 }
 0x342 PF: > { %s12_s9 = sadd.s32 1, %s675_s9  }
 0x343   : > { %p9_p4 = scmp.ge.s32.totalorder %s12_s9, 4  }
 0x345   :  { %11 = sbr.rel (!%p9_p4) target bundleno = 1 (0x1), region = 58 }

</bundles_post_ra>
